<compile_context>
chip_gen: v6e
topology: v6e:2x2x1
jax: 0.10.0
libtpu: 0.0.40
codegen_flags: <defaults>
</compile_context>

<pallas_src>
import math

import jax
import jax.numpy as jnp
from jax.experimental import pallas as pl
from jax.experimental.pallas import tpu as pltpu


# --------------------------------------------------------------------------- exact GELU
def _erf_poly(x):
    # Abramowitz & Stegun 7.1.26 rational approximation (|err| < 1.5e-7).
    a1, a2, a3, a4, a5 = 0.254829592, -0.284496736, 1.421413741, -1.453152027, 1.061405429
    p = 0.3275911
    ax = jnp.abs(x)
    t = pl.reciprocal(1.0 + p * ax, approx=True)          # EUP slot (cheap)
    poly = ((((a5 * t + a4) * t + a3) * t + a2) * t + a1) * t
    y = 1.0 - poly * jnp.exp(-ax * ax)
    return jnp.where(x >= 0, y, -y)


def _gelu_exact(x):
    return 0.5 * x * (1.0 + _erf_poly(x * (1.0 / math.sqrt(2.0))))


# ------------------------------------------------------------------------ VMEM budgeting
def _vmem_limit_bytes():
    """~75% of physical VMEM, capped at 100 MiB (=> ~96 MiB v5e/v6e, ~48 MiB v7x)."""
    try:
        cap = pltpu.get_tpu_info().vmem_capacity_bytes
    except Exception:
        cap = 64 * 1024 * 1024
    return int(min(cap * 3 // 4, 100 * 1024 * 1024))


def _pick_batch_tile(batch, max_bt=8):
    """Largest divisor of `batch` <= max_bt that still leaves >=2 parallel grid steps."""
    divisors = [d for d in range(1, min(batch, max_bt) + 1) if batch % d == 0]
    for d in reversed(divisors):
        if batch // d >= 2:
            return d
    return divisors[-1]


# ----------------------------------------------------------------------- patch embedding
def _patch_embed_kernel(p_ref, w_ref, b_ref, o_ref):
    # One lane-dense (tm, K) x (K, E) matmul per grid step — bf16 operands, f32 accum.
    emb = jnp.dot(p_ref[...], w_ref[...], preferred_element_type=jnp.float32)
    o_ref[...] = emb + b_ref[...]


def patch_embed(patches2d, w, b):
    BP, K = patches2d.shape
    E = w.shape[1]
    tm = BP if BP <= 512 else 512
    return pl.pallas_call(
        _patch_embed_kernel,
        out_shape=jax.ShapeDtypeStruct((BP, E), jnp.float32),
        grid=(pl.cdiv(BP, tm),),
        in_specs=[
            pl.BlockSpec((tm, K), lambda i: (i, 0)),
            pl.BlockSpec((K, E), lambda i: (0, 0)),
            pl.BlockSpec((1, E), lambda i: (0, 0)),
        ],
        out_specs=pl.BlockSpec((tm, E), lambda i: (i, 0)),
        compiler_params=pltpu.CompilerParams(
            dimension_semantics=("parallel",),
            vmem_limit_bytes=_vmem_limit_bytes()),
    )(patches2d, w, b)


# ------------------------------------------------------------- fused transformer encoder
def make_encoder_kernel(n_heads, d_head, d_model, bt, n_tokens):
    scale = 1.0 / math.sqrt(d_head)
    eps = 1e-5
    D = d_model
    NB = bt * n_tokens

    def kernel(cls_ref, pos_ref, x_ref, g1, b1, wqkv, bqkv, wo, bo,
               g2, b2, w1, bm1, w2, bm2, o_ref, res_ref, ctx_ref):
        layer = pl.program_id(1)

        # Layer 0: assemble the residual stream (CLS + pos, patches + pos) into VMEM.
        # It stays resident across all layers of this batch block (no HBM round trips).
        # Correct only because the layer axis is the innermost (fastest) grid axis.
        @pl.when(layer == 0)
        def _init_residual():
            cls_row = (cls_ref[...] + pos_ref[0:1, :])[None]          # (1, 1, D)
            res_ref[:, 0:1, :] = jnp.broadcast_to(cls_row, (bt, 1, D))
            res_ref[:, 1:, :] = x_ref[...] + pos_ref[1:, :]

        x = res_ref[...]                                              # (Bt, N, D) f32

        def layernorm(v, g, b):                                       # f32 elementwise
            mu = jnp.mean(v, axis=-1, keepdims=True)
            var = jnp.mean(jnp.square(v - mu), axis=-1, keepdims=True)
            return (v - mu) * jax.lax.rsqrt(var + eps) * g[0] + b[0]

        # ---- LN1 + fused QKV projection: one (Bt*N, D) x (D, 3D) MXU matmul ----
        xn = layernorm(x, g1, b1)
        xn2d = xn.astype(jnp.bfloat16).reshape(NB, D)
        qkv = jnp.dot(xn2d, wqkv[0], preferred_element_type=jnp.float32) + bqkv[0]
        qkv = qkv.reshape(bt, n_tokens, 3 * D)

        # ---- per-head attention (scores / softmax / ctx), heads written to ctx scratch.
        # Static unroll is fine for small H; ctx is flushed to the scratch ref each
        # iteration so per-head temporaries stay short-lived.
        for h in range(n_heads):
            lo = h * d_head
            q = qkv[:, :, lo:lo + d_head].astype(jnp.bfloat16)
            k = qkv[:, :, D + lo:D + lo + d_head].astype(jnp.bfloat16)
            v = qkv[:, :, 2 * D + lo:2 * D + lo + d_head].astype(jnp.bfloat16)
            s = jax.lax.dot_general(q, k, (((2,), (2,)), ((0,), (0,))),
                                    preferred_element_type=jnp.float32) * scale
            m = jnp.max(s, axis=-1, keepdims=True)
            e = jnp.exp(s - m)
            p = e * pl.reciprocal(jnp.sum(e, axis=-1, keepdims=True), approx=True)
            ctx = jax.lax.dot_general(p.astype(jnp.bfloat16), v,
                                      (((2,), (1,)), ((0,), (0,))),
                                      preferred_element_type=jnp.float32)
            ctx_ref[:, :, lo:lo + d_head] = ctx.astype(jnp.bfloat16)

        # ---- fused output projection: one (Bt*N, D) x (D, D) matmul ----
        attn = jnp.dot(ctx_ref[...].reshape(NB, D), wo[0],
                       preferred_element_type=jnp.float32)
        x2 = x + attn.reshape(bt, n_tokens, D) + bo[0]                # residual 1

        # ---- LN2 + MLP (full per-layer w1/w2 resident) ----
        xn2 = layernorm(x2, g2, b2)
        h1 = jnp.dot(xn2.astype(jnp.bfloat16).reshape(NB, D), w1[0],
                     preferred_element_type=jnp.float32) + bm1[0]
        h1 = _gelu_exact(h1)
        y = jnp.dot(h1.astype(jnp.bfloat16), w2[0],
                    preferred_element_type=jnp.float32) + bm2[0]
        new_x = x2 + y.reshape(bt, n_tokens, D)                       # residual 2

        res_ref[...] = new_x

        @pl.when(layer == pl.num_programs(1) - 1)
        def _writeback():
            o_ref[...] = new_x

    return kernel


def encoder_stack(emb, cls, pos, lp, n_heads):
    B, P, D = emb.shape
    N = P + 1
    L = lp["wqkv"].shape[0]
    D4 = lp["w1"].shape[-1]
    Bt = _pick_batch_tile(B)
    nb = B // Bt

    kern = make_encoder_kernel(n_heads, D // n_heads, D, Bt, N)

    def w3(a, c):   # (L, a, c) stacked param; one layer slice per grid step
        return pl.BlockSpec((1, a, c), lambda b, l: (l, 0, 0))

    in_specs = [
        pl.BlockSpec((1, D), lambda b, l: (0, 0)),          # cls
        pl.BlockSpec((N, D), lambda b, l: (0, 0)),          # pos
        pl.BlockSpec((Bt, P, D), lambda b, l: (b, 0, 0)),   # patch embeddings
        w3(1, D), w3(1, D),                                 # ln1 gamma/beta
        w3(D, 3 * D), w3(1, 3 * D),                         # fused Wqkv, bqkv
        w3(D, D), w3(1, D),                                 # fused Wo, bo
        w3(1, D), w3(1, D),                                 # ln2 gamma/beta
        w3(D, D4), w3(1, D4),                               # fc1
        w3(D4, D), w3(1, D),                                # fc2
    ]
    return pl.pallas_call(
        kern,
        out_shape=jax.ShapeDtypeStruct((B, N, D), jnp.float32),
        grid=(nb, L),                                       # layer axis innermost!
        in_specs=in_specs,
        out_specs=pl.BlockSpec((Bt, N, D), lambda b, l: (b, 0, 0)),
        scratch_shapes=[pltpu.VMEM((Bt, N, D), jnp.float32),    # residual stream
                        pltpu.VMEM((Bt, N, D), jnp.bfloat16)],  # per-head ctx assembly
        compiler_params=pltpu.CompilerParams(
            dimension_semantics=("parallel", "arbitrary"),
            vmem_limit_bytes=_vmem_limit_bytes()),
    )(cls, pos, emb,
      lp["ln1_g"], lp["ln1_b"], lp["wqkv"], lp["bqkv"], lp["wo"], lp["bo"],
      lp["ln2_g"], lp["ln2_b"], lp["w1"], lp["b1"], lp["w2"], lp["b2"])


# ------------------------------------------------------------------------- full forward
def extract_patches(x_nchw, ps):
    B, C, H, W = x_nchw.shape
    hp, wp = H // ps, W // ps
    p = x_nchw.reshape(B, C, hp, ps, wp, ps)
    p = p.transpose(0, 2, 4, 1, 3, 5)                       # (B, hp, wp, C, ps, ps)
    return p.reshape(B, hp * wp, C * ps * ps)


def vit_forward(x_nchw, packed, patch_size, n_heads):
    B = x_nchw.shape[0]
    patches = extract_patches(x_nchw, patch_size)           # (B, P, K)
    _, P, K = patches.shape
    patches2d = patches.reshape(B * P, K).astype(jnp.bfloat16)   # lane/sublane-dense rows
    emb = patch_embed(patches2d, packed["patch_w"], packed["patch_b"])   # (B*P, E) f32
    emb = emb.reshape(B, P, emb.shape[-1])
    return encoder_stack(emb, packed["cls"], packed["pos"], packed, n_heads)


# ---------------------------------------------------------------------- pure-JAX reference
def _ln_ref(x, g, b, eps=1e-5):
    mu = x.mean(-1, keepdims=True)
    var = ((x - mu) ** 2).mean(-1, keepdims=True)
    return (x - mu) / jnp.sqrt(var + eps) * g + b


def vit_reference(x_nchw, params, patch_size, n_heads):
    B = x_nchw.shape[0]
    patches = extract_patches(x_nchw, patch_size)
    emb = jnp.einsum("bpk,ke->bpe", patches, params["patch_w"]) + params["patch_b"]
    E = emb.shape[-1]
    cls = jnp.broadcast_to(params["cls"][None, None, :], (B, 1, E))
    x = jnp.concatenate([cls, emb], axis=1) + params["pos"][None]

    for lp in params["layers"]:
        dh = lp["wq"].shape[-1]
        xn = _ln_ref(x, lp["ln1_g"], lp["ln1_b"])
        attn = jnp.zeros_like(x)
        for h in range(n_heads):
            Q = jnp.einsum("bnd,de->bne", xn, lp["wq"][h]) + lp["bq"][h]
            K = jnp.einsum("bnd,de->bne", xn, lp["wk"][h]) + lp["bk"][h]
            V = jnp.einsum("bnd,de->bne", xn, lp["wv"][h]) + lp["bv"][h]
            w = jnp.einsum("bnd,bmd->bnm", Q, K) / math.sqrt(dh)
            w = jax.nn.softmax(w, axis=-1)
            ctx = jnp.einsum("bnm,bmd->bnd", w, V)
            attn = attn + jnp.einsum("bnd,de->bne", ctx, lp["wo"][h])
        x = x + attn + lp["bo"]
        xn2 = _ln_ref(x, lp["ln2_g"], lp["ln2_b"])
        h1 = xn2 @ lp["w1"] + lp["b1"]
        h1 = 0.5 * h1 * (1.0 + jax.scipy.special.erf(h1 / math.sqrt(2.0)))
        x = h1 @ lp["w2"] + lp["b2"] + x
    return x


# -------------------------------------------------------------------------- parameters
def init_params(key, D, ps, n_heads, n_layers, C, H):
    P = (H // ps) ** 2
    N = P + 1
    K = C * ps * ps
    D4 = 4 * D
    Dh = D // n_heads
    s = 0.02
    keys = jax.random.split(key, 4 + n_layers)

    def nrm(k, shape):
        return jax.random.normal(k, shape, dtype=jnp.float32) * s

    params = {
        "patch_w": nrm(keys[0], (K, D)),     # Conv2d weight reshaped (E,C,ps,ps)->(K,E)
        "patch_b": nrm(keys[1], (D,)),
        "cls": nrm(keys[2], (D,)),
        "pos": nrm(keys[3], (N, D)),
        "layers": [],
    }
    for li in range(n_layers):
        lk = jax.random.split(keys[4 + li], 12)
        layer = dict(
            ln1_g=jnp.ones((D,), jnp.float32), ln1_b=jnp.zeros((D,), jnp.float32),
            wq=nrm(lk[0], (n_heads, D, Dh)), bq=nrm(lk[1], (n_heads, Dh)),
            wk=nrm(lk[2], (n_heads, D, Dh)), bk=nrm(lk[3], (n_heads, Dh)),
            wv=nrm(lk[4], (n_heads, D, Dh)), bv=nrm(lk[5], (n_heads, Dh)),
            wo=nrm(lk[6], (n_heads, Dh, D)), bo=nrm(lk[7], (D,)),
            ln2_g=jnp.ones((D,), jnp.float32), ln2_b=jnp.zeros((D,), jnp.float32),
            w1=nrm(lk[8], (D, D4)), b1=nrm(lk[9], (D4,)),
            w2=nrm(lk[10], (D4, D)), b2=nrm(lk[11], (D,)),
        )
        params["layers"].append(layer)
    return params


def pack_params(params):
    """Stack layer params along a leading L axis, fuse QKV / Wo, matmul weights -> bf16."""
    layers = params["layers"]
    D = params["pos"].shape[-1]

    def fuse_qkv_w(lp):
        def t(w):  # (H, D, Dh) -> (D, H*Dh), column order = (head, dh)
            return jnp.transpose(w, (1, 0, 2)).reshape(D, -1)
        return jnp.concatenate([t(lp["wq"]), t(lp["wk"]), t(lp["wv"])], axis=1)  # (D, 3D)

    def fuse_qkv_b(lp):
        return jnp.concatenate(
            [lp["bq"].reshape(-1), lp["bk"].reshape(-1), lp["bv"].reshape(-1)], axis=0)

    def fuse_o_w(lp):   # (H, Dh, D) -> (H*Dh, D), row order = (head, dh)
        return lp["wo"].reshape(-1, D)

    def stk(fn):
        return jnp.stack([fn(lp) for lp in layers], axis=0)

    return {
        "patch_w": params["patch_w"].astype(jnp.bfloat16),
        "patch_b": params["patch_b"][None, :],                       # (1, E) f32
        "cls": params["cls"][None, :],                               # (1, E) f32
        "pos": params["pos"],                                        # (N, E) f32
        "ln1_g": stk(lambda lp: lp["ln1_g"])[:, None, :],
        "ln1_b": stk(lambda lp: lp["ln1_b"])[:, None, :],
        "wqkv": stk(fuse_qkv_w).astype(jnp.bfloat16),                # (L, D, 3D)
        "bqkv": stk(fuse_qkv_b)[:, None, :],                         # (L, 1, 3D) f32
        "wo": stk(fuse_o_w).astype(jnp.bfloat16),                    # (L, D, D)
        "bo": stk(lambda lp: lp["bo"])[:, None, :],
        "ln2_g": stk(lambda lp: lp["ln2_g"])[:, None, :],
        "ln2_b": stk(lambda lp: lp["ln2_b"])[:, None, :],
        "w1": stk(lambda lp: lp["w1"]).astype(jnp.bfloat16),         # (L, D, 4D)
        "b1": stk(lambda lp: lp["b1"])[:, None, :],
        "w2": stk(lambda lp: lp["w2"]).astype(jnp.bfloat16),         # (L, 4D, D)
        "b2": stk(lambda lp: lp["b2"])[:, None, :],
    }


# --------------------------------------------------------------------------------- main
if __name__ == "__main__":
    B, C, IMG = 2, 3, 16          # PatchEmbedding hard-codes channels=3 in ViTBackbone
    ps, D, n_heads, n_layers = 4, 32, 2, 2
    P = (IMG // ps) ** 2          # 16 patches
    N = P + 1                     # +CLS -> 17

    key = jax.random.PRNGKey(0)
    kx, kparam = jax.random.split(key)
    x = jax.random.normal(kx, (B, C, IMG, IMG), dtype=jnp.float32)
    params = init_params(kparam, D=D, ps=ps, n_heads=n_heads,
                         n_layers=n_layers, C=C, H=IMG)
    packed = pack_params(params)

    out = vit_forward(x, packed, ps, n_heads)
    out = jax.block_until_ready(out)
    assert out.shape == (B, N, D), out.shape

    ref = vit_reference(x, params, ps, n_heads)
    ref = jax.block_until_ready(ref)
    max_err = float(jnp.max(jnp.abs(out - ref)))
    if not jnp.allclose(out, ref, rtol=2e-2, atol=2e-2):
        raise AssertionError(f"Pallas / reference mismatch, max abs err = {max_err}")

    print("KERNEL_OK")
</pallas_src>

<mosaic_0001>
module attributes {stable_mosaic.version = 11 : i64} {
  func.func @_patch_embed_kernel(%arg0: i32, %arg1: memref<32x48xbf16, #tpu.memory_space<vmem>>, %arg2: memref<48x32xbf16, #tpu.memory_space<vmem>>, %arg3: memref<1x32xf32, #tpu.memory_space<vmem>>, %arg4: memref<32x32xf32, #tpu.memory_space<vmem>>) attributes {dimension_semantics = [#tpu.dimension_semantics<parallel>], iteration_bounds = array<i64: 1>, scalar_prefetch = 0 : i64, scratch_operands = 0 : i64, tpu.core_type = #tpu.core_type<tc>, window_params = [{transform_indices = @transform_0, window_bounds = array<i64: 32, 48>}, {pipeline_mode = #tpu.pipeline_mode<synchronous>, transform_indices = @transform_1, window_bounds = array<i64: 48, 32>}, {pipeline_mode = #tpu.pipeline_mode<synchronous>, transform_indices = @transform_2, window_bounds = array<i64: 1, 32>}, {transform_indices = @transform_3, window_bounds = array<i64: 32, 32>}]} {
    %c0 = arith.constant 0 : index
    %c0_0 = arith.constant 0 : index
    %0 = vector.load %arg1[%c0, %c0_0] : memref<32x48xbf16, #tpu.memory_space<vmem>>, vector<32x48xbf16>
    %c0_1 = arith.constant 0 : index
    %c0_2 = arith.constant 0 : index
    %1 = vector.load %arg2[%c0_1, %c0_2] : memref<48x32xbf16, #tpu.memory_space<vmem>>, vector<48x32xbf16>
    %cst = arith.constant dense<0.000000e+00> : vector<32x32xf32>
    %2 = tpu.matmul %0, %1, %cst {dimension_numbers = #tpu.dot_dimension_numbers<[1], [0], [0], [1], [0, 0, 1, 1], [], []>} : vector<32x48xbf16>, vector<48x32xbf16>, vector<32x32xf32> -> vector<32x32xf32>
    %c0_3 = arith.constant 0 : index
    %c0_4 = arith.constant 0 : index
    %3 = vector.load %arg3[%c0_3, %c0_4] : memref<1x32xf32, #tpu.memory_space<vmem>>, vector<1x32xf32>
    %4 = vector.broadcast %3 : vector<1x32xf32> to vector<32x32xf32>
    %5 = arith.addf %2, %4 : vector<32x32xf32>
    %c0_5 = arith.constant 0 : index
    %c0_6 = arith.constant 0 : index
    %6 = vector.load %arg4[%c0_5, %c0_6] : memref<32x32xf32, #tpu.memory_space<vmem>>, vector<32x32xf32>
    tpu.vector_store %arg4[%c0_5, %c0_6], %5 {strides = array<i32>} : memref<32x32xf32, #tpu.memory_space<vmem>>, vector<32x32xf32>,
    return
  }
  func.func @transform_0(%arg0: i32) -> (i32, i32) {
    %c0_i32 = arith.constant 0 : i32
    %c0_i32_0 = arith.constant 0 : i32
    return %arg0, %c0_i32 : i32, i32
  }
  func.func @transform_1(%arg0: i32) -> (i32, i32) {
    %c0_i32 = arith.constant 0 : i32
    %c0_i32_0 = arith.constant 0 : i32
    %c0_i32_1 = arith.constant 0 : i32
    return %c0_i32, %c0_i32_0 : i32, i32
  }
  func.func @transform_2(%arg0: i32) -> (i32, i32) {
    %c0_i32 = arith.constant 0 : i32
    %c0_i32_0 = arith.constant 0 : i32
    %c0_i32_1 = arith.constant 0 : i32
    return %c0_i32, %c0_i32_0 : i32, i32
  }
  func.func @transform_3(%arg0: i32) -> (i32, i32) {
    %c0_i32 = arith.constant 0 : i32
    %c0_i32_0 = arith.constant 0 : i32
    return %arg0, %c0_i32 : i32, i32
  }
}

</mosaic_0001>

<bundles_post_ra>
// kernel: tpu_custom_call.1
= control target key start
LH: loop header
LB: loop body
LE: loop exit
PB: predicated region body
PF: predicated region fallthrough
CT: control target
= control target key end

     0   :  { %vm61_vm0 = vcmask 392192   ;;  %s235_s0 = inlined_call_operand.vmem [shape: bf16[32,48], index: 0, kind: input, shape index: {}]   ;;  %s236_s1 = inlined_call_operand.vmem [shape: bf16[48,32], index: 1, kind: input, shape index: {}]   ;;  %s237_s2 = inlined_call_operand.vmem [shape: f32[1,32], index: 2, kind: input, shape index: {}]   ;;  %s238_s3 = inlined_call_operand.hbm [shape: f32[32,32], index: 3, kind: output, shape index: {}]  }
   0x1   :  { %v164_v0 = vld [vmem:[%s236_s1 + $0x10] sm:$0xff]   ;;  %v165_v1 = vld [vmem:[%s236_s1 + $0x8] sm:$0xff]   ;;  %v167_v2 = vld [vmem:[%s235_s0] sm:$0xff]  }
   0x2   :  { %151 = vmatprep.subr.bf16.mxu0 %v164_v0  ;;  %v166_v3 = vld [vmem:[%s236_s1] sm:$0xff]   ;;  %157 = vmatprep.mubr.msk.bf16.mxu0 %vm61_vm0, %v167_v2 }
   0x3   :  { %152 = vmatpush3.bf16.msra.mxu0 %v164_v0 }
   0x4   :  { %153 = vmatprep.subr.bf16.mxu0 %v165_v1 }
   0x5   :  { %8 = vsyncpa [#allocation3], 0  ;;  %v168_v4 = vld [vmem:[%s235_s0 + $0x8] sm:$0xff]   ;;  %v138_v5 = vld [vmem:[%s237_s2] ss:$0 sm:$0xff]  ;;  %vm117_vm1 = vcmask 261120  }
   0x6   :  { %s191_s1 = smov [#allocation2]  }
   0x7   :  { %154 = vmatpush3.bf16.msra.mxu0 %v165_v1  ;;  %s127_s24 = sshll.u32 %s191_s1, 4  ;;  %s128_s24 = int_to_ptr.vmem [resolvable:$true] %s127_s24 }
   0x8   :  { %155 = vmatprep.subr.bf16.mxu0 %v166_v3  ;;  %s169_s0 = scalar_lea.vmem %s128_s24, 512  ;;  %p174_p1 = scmp.lt.s32.totalorder %s128_s24, %s128_s24 }
   0x9   :  { %p170_p0 = scmp.ne.s32.totalorder %s128_s24, %s169_s0  ;;  %p175_p2 = scmp.lt.s32.totalorder %s169_s0, %s169_s0 }
   0xb   :  { %156 = vmatpush3.bf16.msra.mxu0 %v166_v3  ;;  %p176_p3 = por %p175_p2, %p174_p1 }
   0xd   :  { %p177_p4 = pnand %p176_p3, %p170_p0 }
   0xe   :  { %158 = vmatmul.mubr.msk.bf16.vlgmr.msra.gmra.mxu0 %vm61_vm0, %v168_v4 }
  0xce   :  { %v159_v6 = vpop.f32.mrf.mxu0 }
  0xcf   :  { %v111_v7 = vadd.f32 %v159_v6, %v138_v5 }
  0xd0   :  { %v102_v8 = vpop.f32.mrf.mxu0 }
  0xd1   :  { %120 = vst.msk [vmem:[#allocation2 + $0x10] sm:$0xff] %vm117_vm1, %v111_v7  ;;  %v103_v9 = vadd.f32 %v138_v5, %v102_v8 }
  0xd2   :  { %v160_v10 = vpop.f32.mrf.mxu0 }
  0xd3   :  { %118 = vst.msk [vmem:[#allocation2] sm:$0xff] %vm117_vm1, %v103_v9  ;;  %v114_v11 = vadd.f32 %v160_v10, %v138_v5 }
  0xd4   :  { %v105_v12 = vpop.f32.mrf.mxu0 }
  0xd5   :  { %121 = vst.msk [vmem:[#allocation2 + $0x18] sm:$0xff] %vm117_vm1, %v114_v11  ;;  %v106_v13 = vadd.f32 %v138_v5, %v105_v12 }
  0xd7   :  { %119 = vst.msk [vmem:[#allocation2 + $0x8] sm:$0xff] %vm117_vm1, %v106_v13 }
  0xd8   :  { %180 = shalt.err (!%p177_p4)
}
  0xd9   :  { %s192_s2 = smov 128   ;;  %s193_s25 = smov 8  }
  0xda   :  { %133 = dma.vmem_to_hbm [thread:$0]  %s128_s24, 512, %s238_s3, [#allocation3], %s192_s2, %s192_s2, %s193_s25  }
  0xdb   :  { %189 = dma.done.wait [#allocation3], 512  }
  0xdc   :  { %190 = vsyncadd [#allocation3], 4294966784 }
  0xdd   :  { %137 = vsyncpa [#allocation3], 1 }

</bundles_post_ra>
